<compile_context>
chip_gen: v7x
topology: tpu7x:2x2x1
jax: 0.10.0
libtpu: 0.0.40
codegen_flags: <defaults>
</compile_context>

<pallas_src>
from functools import partial

import jax
import jax.numpy as jnp
from jax import lax
from jax.experimental import pallas as pl
from jax.experimental.pallas import tpu as pltpu

KERNEL_SIZE = 11
SANM_SHIFT = 0
LEFT_PAD = (KERNEL_SIZE - 1) // 2 + (SANM_SHIFT if SANM_SHIFT > 0 else 0)   # 5
RIGHT_PAD = KERNEL_SIZE - 1 - LEFT_PAD                                       # 5
CENTER = LEFT_PAD          # conv tap that reads x[i] for output row i
HALO = 8                   # staged halo rows per side (>= pad, sublane aligned)


def _round_up(v, m):
    return (v + m - 1) // m * m


def _cdiv(a, b):
    return (a + b - 1) // b


# ---------------------------------------------------------------------------
# Kernels
# ---------------------------------------------------------------------------
def _fsmn_kernel_masked(t_total, x_ref, xl_ref, xr_ref, m_ref, ml_ref, mr_ref,
                        w_ref, o_ref, xwin_ref):
    # x_ref : (1, tt, D)  main tile, rows [ji*tt, ji*tt+tt) of x
    # xl_ref: (1, 8, D)   left halo  rows [ji*tt-8, ji*tt)        (junk for ji==0)
    # xr_ref: (1, 8, D)   right halo rows [(ji+1)*tt, +8)         (junk past T)
    # m_ref/ml_ref/mr_ref: matching (.., 1) f32 mask tiles
    # w_ref : (K, D) f32 depthwise weights, tap-major, residual folded into CENTER
    # o_ref : (1, tt, D)
    # xwin_ref: (8 + tt + 8, D) f32 scratch — aligned conv window (masked input)
    ji = pl.program_id(0)
    tt = o_ref.shape[1]

    m_main = m_ref[0]                                           # (tt, 1) f32
    xwin_ref[HALO:HALO + tt, :] = x_ref[0].astype(jnp.float32) * m_main

    # Rows >= T of a partial last tile are OOB garbage in VMEM -> zero them so
    # they cannot leak into valid outputs through the conv taps.
    @pl.when(ji == pl.num_programs(0) - 1)
    def _():
        rows = lax.broadcasted_iota(jnp.int32, (tt, 1), 0)
        valid = rows < (t_total - ji * tt)
        xwin_ref[HALO:HALO + tt, :] = jnp.where(
            valid, xwin_ref[HALO:HALO + tt, :], 0.0)

    # Left halo: zeros for the first tile (this is the conv's left zero-pad).
    xl = xl_ref[0].astype(jnp.float32) * ml_ref[0]
    xwin_ref[0:HALO, :] = jnp.where(ji > 0, xl, 0.0)

    # Right halo: zero any row >= T (conv's right zero-pad / OOB rows).
    rrows = lax.broadcasted_iota(jnp.int32, (HALO, 1), 0)
    rvalid = ((ji + 1) * tt + rrows) < t_total
    xr = xr_ref[0].astype(jnp.float32) * mr_ref[0]
    xwin_ref[HALO + tt:HALO + tt + HALO, :] = jnp.where(rvalid, xr, 0.0)

    # Depthwise 11-tap conv + residual (folded into center tap).  The aligned
    # center slice seeds the f32 accumulator; other taps are 1..5-row shifted.
    w = w_ref[...]                                              # (K, D), read once
    acc = xwin_ref[HALO:HALO + tt, :] * w[CENTER:CENTER + 1, :]
    for k in range(KERNEL_SIZE):                                # static unrolled
        if k == CENTER:
            continue
        off = HALO - LEFT_PAD + k                               # 3 .. 13
        acc = acc + xwin_ref[off:off + tt, :] * w[k:k + 1, :]

    o_ref[0] = (acc * m_main).astype(o_ref.dtype)


def _fsmn_kernel_nomask(t_total, x_ref, xl_ref, xr_ref, w_ref, o_ref, xwin_ref):
    ji = pl.program_id(0)
    tt = o_ref.shape[1]

    xwin_ref[HALO:HALO + tt, :] = x_ref[0].astype(jnp.float32)

    @pl.when(ji == pl.num_programs(0) - 1)
    def _():
        rows = lax.broadcasted_iota(jnp.int32, (tt, 1), 0)
        valid = rows < (t_total - ji * tt)
        xwin_ref[HALO:HALO + tt, :] = jnp.where(
            valid, xwin_ref[HALO:HALO + tt, :], 0.0)

    xwin_ref[0:HALO, :] = jnp.where(ji > 0, xl_ref[0].astype(jnp.float32), 0.0)

    rrows = lax.broadcasted_iota(jnp.int32, (HALO, 1), 0)
    rvalid = ((ji + 1) * tt + rrows) < t_total
    xwin_ref[HALO + tt:HALO + tt + HALO, :] = jnp.where(
        rvalid, xr_ref[0].astype(jnp.float32), 0.0)

    w = w_ref[...]
    acc = xwin_ref[HALO:HALO + tt, :] * w[CENTER:CENTER + 1, :]
    for k in range(KERNEL_SIZE):
        if k == CENTER:
            continue
        off = HALO - LEFT_PAD + k
        acc = acc + xwin_ref[off:off + tt, :] * w[k:k + 1, :]

    o_ref[0] = acc.astype(o_ref.dtype)


# ---------------------------------------------------------------------------
# Wrapper
# ---------------------------------------------------------------------------
def _pick_tile_t(t, d, in_item, out_item):
    # Per time-row VMEM: 2x-buffered input tile + 2x-buffered output tile +
    # f32 window row (scratch is single-buffered).  Keep the footprint well
    # under every generation's scoped VMEM default.
    budget = 12 * 1024 * 1024
    per_row = d * (2 * in_item + 2 * out_item + 4) + 64
    tt_max = max(8, min(2048, budget // per_row))
    tt_max = (tt_max // 8) * 8
    # Balanced tiles: waste at most 7 rows of padding instead of up to tt-1.
    n_t = _cdiv(t, tt_max)
    tt = _round_up(_cdiv(t, n_t), 8)
    return tt


def sanm_decoder_attention(x, weight, attention_mask=None, mask_shfit_chunk=None,
                           *, tile_t=None):
    """x: (B, T, D); weight: depthwise Conv1d weight (D, K) or (D, 1, K);
    attention_mask: (B, T) / (B, 1, T) / (B, T, 1) or None;
    mask_shfit_chunk: broadcastable to (B, T, 1) or None."""
    b, t, d = x.shape
    kk = KERNEL_SIZE
    out_dtype = x.dtype
    in_b = x.dtype.itemsize
    out_b = jnp.dtype(out_dtype).itemsize

    # (D, K) -> (K, D), kept in f32 (tiny, fetched once per step, preserves the
    # PyTorch f32 conv weights for bf16 activations).  Residual folded: w[5]+=1.
    w_kd = jnp.transpose(jnp.reshape(weight, (d, kk)), (1, 0)).astype(jnp.float32)
    w_kd = w_kd.at[CENTER, :].add(1.0)

    if tile_t is not None:
        assert tile_t % 8 == 0 and tile_t >= 8, "tile_t must be a multiple of 8"
        tt = min(tile_t, _round_up(t, 8))
    else:
        tt = _pick_tile_t(t, d, in_b, out_b)
    n_t = _cdiv(t, tt)
    tpb = tt // HALO            # main-tile size in 8-row halo blocks
    nhb = _cdiv(t, HALO)        # number of 8-row blocks along T (for clamping)

    x_main_spec = pl.BlockSpec((1, tt, d), lambda ji, bi: (bi, ji, 0))
    x_left_spec = pl.BlockSpec(
        (1, HALO, d), lambda ji, bi: (bi, jnp.maximum(ji * tpb - 1, 0), 0))
    x_right_spec = pl.BlockSpec(
        (1, HALO, d), lambda ji, bi: (bi, jnp.minimum((ji + 1) * tpb, nhb - 1), 0))
    w_spec = pl.BlockSpec((kk, d), lambda ji, bi: (0, 0))
    o_spec = pl.BlockSpec((1, tt, d), lambda ji, bi: (bi, ji, 0))

    footprint = (2 * (tt + 2 * HALO) * d * in_b      # x main + halos, double-buffered
                 + 2 * tt * d * out_b                # output, double-buffered
                 + (tt + 2 * HALO) * d * 4           # f32 window scratch
                 + 4 * (tt + 2 * HALO) * 4           # mask tiles
                 + 2 * kk * d * 4)                   # weights
    vmem_limit = int(min(64 << 20, max(16 << 20, int(footprint * 1.5))))

    cparams = pltpu.CompilerParams(
        # time axis leads the grid so it (not a size-1 batch) is core-sharded
        # across the two TensorCores on v7x; no-op on single-TC v5e/v6e.
        dimension_semantics=("parallel", "parallel"),
        vmem_limit_bytes=vmem_limit)
    cost = pl.CostEstimate(
        flops=int(b) * int(t) * int(d) * 2 * kk,
        transcendentals=0,
        bytes_accessed=int(b * t * d * (in_b + out_b) + b * t * 8 + kk * d * 4))
    out_shape = jax.ShapeDtypeStruct((b, t, d), out_dtype)

    if attention_mask is not None:
        m = jnp.reshape(attention_mask, (b, t, 1)).astype(jnp.float32)
        if mask_shfit_chunk is not None:
            m = m * jnp.reshape(mask_shfit_chunk, (b, t, 1)).astype(jnp.float32)

        m_main_spec = pl.BlockSpec((1, tt, 1), lambda ji, bi: (bi, ji, 0))
        m_left_spec = pl.BlockSpec(
            (1, HALO, 1), lambda ji, bi: (bi, jnp.maximum(ji * tpb - 1, 0), 0))
        m_right_spec = pl.BlockSpec(
            (1, HALO, 1), lambda ji, bi: (bi, jnp.minimum((ji + 1) * tpb, nhb - 1), 0))

        return pl.pallas_call(
            partial(_fsmn_kernel_masked, t),
            out_shape=out_shape,
            grid_spec=pltpu.PrefetchScalarGridSpec(
                num_scalar_prefetch=0,
                grid=(n_t, b),
                in_specs=[x_main_spec, x_left_spec, x_right_spec,
                          m_main_spec, m_left_spec, m_right_spec, w_spec],
                out_specs=o_spec,
                scratch_shapes=[pltpu.VMEM((tt + 2 * HALO, d), jnp.float32)]),
            compiler_params=cparams,
            cost_estimate=cost,
        )(x, x, x, m, m, m, w_kd)

    # Specialized no-mask variant: no mask DMA streams, no mask multiplies.
    return pl.pallas_call(
        partial(_fsmn_kernel_nomask, t),
        out_shape=out_shape,
        grid_spec=pltpu.PrefetchScalarGridSpec(
            num_scalar_prefetch=0,
            grid=(n_t, b),
            in_specs=[x_main_spec, x_left_spec, x_right_spec, w_spec],
            out_specs=o_spec,
            scratch_shapes=[pltpu.VMEM((tt + 2 * HALO, d), jnp.float32)]),
        compiler_params=cparams,
        cost_estimate=cost,
    )(x, x, x, w_kd)


# ---------------------------------------------------------------------------
# Pure-JAX reference mirroring the PyTorch forward (no residual fold)
# ---------------------------------------------------------------------------
def _reference(x, weight, attention_mask=None, mask_shfit_chunk=None):
    b, t, d = x.shape
    w = jnp.reshape(weight, (d, KERNEL_SIZE))
    if attention_mask is not None:
        mask = jnp.reshape(attention_mask, (b, t, 1)).astype(x.dtype)
        if mask_shfit_chunk is not None:
            mask = mask * jnp.reshape(mask_shfit_chunk, (b, t, 1)).astype(x.dtype)
        inputs = x * mask
    else:
        mask = None
        inputs = x
    xp = jnp.pad(inputs, ((0, 0), (LEFT_PAD, RIGHT_PAD), (0, 0)))
    out = jnp.zeros_like(inputs)
    for k in range(KERNEL_SIZE):
        out = out + xp[:, k:k + t, :] * w[:, k][None, None, :]
    out = out + inputs
    if mask is not None:
        out = out * mask
    return out


if __name__ == "__main__":
    key = jax.random.PRNGKey(0)
    kx, kw, km, kx2, kw2 = jax.random.split(key, 5)

    # --- Test 1: masked path, ragged T (45 over tile 16 -> 3 tiles, partial last
    # tile), D=64 (non-128 channel dim, no padding anywhere), exercises halos.
    B, T, D = 2, 45, 64
    x = jax.random.normal(kx, (B, T, D), dtype=jnp.float32)
    weight = jax.random.normal(kw, (D, KERNEL_SIZE), dtype=jnp.float32) * 0.1
    lengths = jnp.array([T, T - 7])
    attention_mask = (jnp.arange(T)[None, :] < lengths[:, None]).astype(jnp.float32)
    mask_shfit_chunk = (jax.random.uniform(km, (B, T, 1)) > 0.2).astype(jnp.float32)

    out = sanm_decoder_attention(x, weight, attention_mask, mask_shfit_chunk, tile_t=16)
    out = jax.block_until_ready(out)
    ref = _reference(x, weight, attention_mask, mask_shfit_chunk)
    assert out.shape == (B, T, D)
    assert jnp.allclose(out, ref, atol=1e-5, rtol=1e-5), "masked path mismatch vs reference"

    # --- Test 2: no-mask specialized path, single tile (auto tile pick), B=1,
    # lane-dense D=128.
    B2, T2, D2 = 1, 48, 128
    x2 = jax.random.normal(kx2, (B2, T2, D2), dtype=jnp.float32)
    weight2 = jax.random.normal(kw2, (D2, 1, KERNEL_SIZE), dtype=jnp.float32) * 0.1
    out2 = sanm_decoder_attention(x2, weight2, None, None)
    out2 = jax.block_until_ready(out2)
    ref2 = _reference(x2, weight2, None, None)
    assert out2.shape == (B2, T2, D2)
    assert jnp.allclose(out2, ref2, atol=1e-5, rtol=1e-5), "no-mask path mismatch vs reference"

    print("KERNEL_OK")
</pallas_src>

<mosaic_0001>
module attributes {stable_mosaic.version = 11 : i64} {
  func.func @_fsmn_kernel_masked(%arg0: i32, %arg1: i32, %arg2: memref<1x16x64xf32, #tpu.memory_space<vmem>>, %arg3: memref<1x8x64xf32, #tpu.memory_space<vmem>>, %arg4: memref<1x8x64xf32, #tpu.memory_space<vmem>>, %arg5: memref<1x16x1xf32, #tpu.memory_space<vmem>>, %arg6: memref<1x8x1xf32, #tpu.memory_space<vmem>>, %arg7: memref<1x8x1xf32, #tpu.memory_space<vmem>>, %arg8: memref<11x64xf32, #tpu.memory_space<vmem>>, %arg9: memref<1x16x64xf32, #tpu.memory_space<vmem>>, %arg10: memref<32x64xf32, #tpu.memory_space<vmem>>) attributes {dimension_semantics = [#tpu.dimension_semantics<parallel>, #tpu.dimension_semantics<parallel>], iteration_bounds = array<i64: 3, 2>, scalar_prefetch = 0 : i64, scratch_operands = 1 : i64, tpu.core_type = #tpu.core_type<tc>, window_params = [{transform_indices = @transform_0, window_bounds = array<i64: 1, 16, 64>}, {transform_indices = @transform_1, window_bounds = array<i64: 1, 8, 64>}, {transform_indices = @transform_2, window_bounds = array<i64: 1, 8, 64>}, {transform_indices = @transform_3, window_bounds = array<i64: 1, 16, 1>}, {transform_indices = @transform_4, window_bounds = array<i64: 1, 8, 1>}, {transform_indices = @transform_5, window_bounds = array<i64: 1, 8, 1>}, {pipeline_mode = #tpu.pipeline_mode<synchronous>, transform_indices = @transform_6, window_bounds = array<i64: 11, 64>}, {transform_indices = @transform_7, window_bounds = array<i64: 1, 16, 64>}]} {
    %c0 = arith.constant 0 : index
    %c0_0 = arith.constant 0 : index
    %c0_1 = arith.constant 0 : index
    %0 = vector.load %arg5[%c0, %c0_0, %c0_1] : memref<1x16x1xf32, #tpu.memory_space<vmem>>, vector<1x16x1xf32>
    %1 = vector.shape_cast %0 : vector<1x16x1xf32> to vector<16x1xf32>
    %c0_2 = arith.constant 0 : index
    %c0_3 = arith.constant 0 : index
    %c0_4 = arith.constant 0 : index
    %2 = vector.load %arg2[%c0_2, %c0_3, %c0_4] : memref<1x16x64xf32, #tpu.memory_space<vmem>>, vector<1x16x64xf32>
    %3 = vector.shape_cast %2 : vector<1x16x64xf32> to vector<16x64xf32>
    %4 = vector.broadcast %1 : vector<16x1xf32> to vector<16x64xf32>
    %5 = arith.mulf %3, %4 : vector<16x64xf32>
    %c8 = arith.constant 8 : index
    %c0_5 = arith.constant 0 : index
    %6 = vector.load %arg10[%c8, %c0_5] : memref<32x64xf32, #tpu.memory_space<vmem>>, vector<16x64xf32>
    tpu.vector_store %arg10[%c8, %c0_5], %5 {strides = array<i32>} : memref<32x64xf32, #tpu.memory_space<vmem>>, vector<16x64xf32>,
    %c2_i32 = arith.constant 2 : i32
    %7 = arith.cmpi eq, %arg0, %c2_i32 : i32
    %8 = arith.extui %7 : i1 to i32
    %c0_i32 = arith.constant 0 : i32
    %9 = arith.cmpi ne, %8, %c0_i32 : i32
    scf.if %9 {
      %98 = tpu.iota {dimensions = array<i32: 0>} : vector<16x1xi32>
      %c16_i32_40 = arith.constant 16 : i32
      %99 = arith.muli %arg0, %c16_i32_40 : i32
      %c45_i32_41 = arith.constant 45 : i32
      %100 = arith.subi %c45_i32_41, %99 : i32
      %101 = vector.broadcast %100 : i32 to vector<16x1xi32>
      %102 = arith.cmpi slt, %98, %101 : vector<16x1xi32>
      %c8_42 = arith.constant 8 : index
      %c0_43 = arith.constant 0 : index
      %103 = vector.load %arg10[%c8_42, %c0_43] : memref<32x64xf32, #tpu.memory_space<vmem>>, vector<16x64xf32>
      %cst_44 = arith.constant 0.000000e+00 : f32
      %104 = vector.shape_cast %102 : vector<16x1xi1> to vector<16x1xi1>
      %105 = vector.broadcast %104 : vector<16x1xi1> to vector<16x64xi1>
      %106 = vector.broadcast %cst_44 : f32 to vector<16x64xf32>
      %107 = arith.select %105, %103, %106 : vector<16x64xi1>, vector<16x64xf32>
      %c8_45 = arith.constant 8 : index
      %c0_46 = arith.constant 0 : index
      %108 = vector.load %arg10[%c8_45, %c0_46] : memref<32x64xf32, #tpu.memory_space<vmem>>, vector<16x64xf32>
      tpu.vector_store %arg10[%c8_45, %c0_46], %107 {strides = array<i32>} : memref<32x64xf32, #tpu.memory_space<vmem>>, vector<16x64xf32>,
    } else {
    }
    %c0_6 = arith.constant 0 : index
    %c0_7 = arith.constant 0 : index
    %c0_8 = arith.constant 0 : index
    %10 = vector.load %arg3[%c0_6, %c0_7, %c0_8] : memref<1x8x64xf32, #tpu.memory_space<vmem>>, vector<1x8x64xf32>
    %11 = vector.shape_cast %10 : vector<1x8x64xf32> to vector<8x64xf32>
    %c0_9 = arith.constant 0 : index
    %c0_10 = arith.constant 0 : index
    %c0_11 = arith.constant 0 : index
    %12 = vector.load %arg6[%c0_9, %c0_10, %c0_11] : memref<1x8x1xf32, #tpu.memory_space<vmem>>, vector<1x8x1xf32>
    %13 = vector.shape_cast %12 : vector<1x8x1xf32> to vector<8x1xf32>
    %14 = vector.broadcast %13 : vector<8x1xf32> to vector<8x64xf32>
    %15 = arith.mulf %11, %14 : vector<8x64xf32>
    %c0_i32_12 = arith.constant 0 : i32
    %16 = arith.cmpi sgt, %arg0, %c0_i32_12 : i32
    %cst = arith.constant 0.000000e+00 : f32
    %17 = vector.broadcast %cst : f32 to vector<8x64xf32>
    %18 = arith.select %16, %15, %17 : vector<8x64xf32>
    %c0_13 = arith.constant 0 : index
    %c0_14 = arith.constant 0 : index
    %19 = vector.load %arg10[%c0_13, %c0_14] : memref<32x64xf32, #tpu.memory_space<vmem>>, vector<8x64xf32>
    tpu.vector_store %arg10[%c0_13, %c0_14], %18 {strides = array<i32>} : memref<32x64xf32, #tpu.memory_space<vmem>>, vector<8x64xf32>,
    %20 = tpu.iota {dimensions = array<i32: 0>} : vector<8x1xi32>
    %c1_i32 = arith.constant 1 : i32
    %21 = arith.addi %arg0, %c1_i32 : i32
    %c16_i32 = arith.constant 16 : i32
    %22 = arith.muli %21, %c16_i32 : i32
    %23 = vector.broadcast %22 : i32 to vector<8x1xi32>
    %24 = arith.addi %23, %20 : vector<8x1xi32>
    %c45_i32 = arith.constant 45 : i32
    %25 = vector.broadcast %c45_i32 : i32 to vector<8x1xi32>
    %26 = arith.cmpi slt, %24, %25 : vector<8x1xi32>
    %c0_15 = arith.constant 0 : index
    %c0_16 = arith.constant 0 : index
    %c0_17 = arith.constant 0 : index
    %27 = vector.load %arg4[%c0_15, %c0_16, %c0_17] : memref<1x8x64xf32, #tpu.memory_space<vmem>>, vector<1x8x64xf32>
    %28 = vector.shape_cast %27 : vector<1x8x64xf32> to vector<8x64xf32>
    %c0_18 = arith.constant 0 : index
    %c0_19 = arith.constant 0 : index
    %c0_20 = arith.constant 0 : index
    %29 = vector.load %arg7[%c0_18, %c0_19, %c0_20] : memref<1x8x1xf32, #tpu.memory_space<vmem>>, vector<1x8x1xf32>
    %30 = vector.shape_cast %29 : vector<1x8x1xf32> to vector<8x1xf32>
    %31 = vector.broadcast %30 : vector<8x1xf32> to vector<8x64xf32>
    %32 = arith.mulf %28, %31 : vector<8x64xf32>
    %cst_21 = arith.constant 0.000000e+00 : f32
    %33 = vector.shape_cast %26 : vector<8x1xi1> to vector<8x1xi1>
    %34 = vector.broadcast %33 : vector<8x1xi1> to vector<8x64xi1>
    %35 = vector.broadcast %cst_21 : f32 to vector<8x64xf32>
    %36 = arith.select %34, %32, %35 : vector<8x64xi1>, vector<8x64xf32>
    %c24 = arith.constant 24 : index
    %c0_22 = arith.constant 0 : index
    %37 = vector.load %arg10[%c24, %c0_22] : memref<32x64xf32, #tpu.memory_space<vmem>>, vector<8x64xf32>
    tpu.vector_store %arg10[%c24, %c0_22], %36 {strides = array<i32>} : memref<32x64xf32, #tpu.memory_space<vmem>>, vector<8x64xf32>,
    %c0_23 = arith.constant 0 : index
    %c0_24 = arith.constant 0 : index
    %38 = vector.load %arg8[%c0_23, %c0_24] : memref<11x64xf32, #tpu.memory_space<vmem>>, vector<11x64xf32>
    %c8_25 = arith.constant 8 : index
    %c0_26 = arith.constant 0 : index
    %39 = vector.load %arg10[%c8_25, %c0_26] : memref<32x64xf32, #tpu.memory_space<vmem>>, vector<16x64xf32>
    %40 = vector.extract_strided_slice %38 {offsets = [5, 0], sizes = [1, 64], strides = [1, 1]} : vector<11x64xf32> to vector<1x64xf32>
    %41 = vector.broadcast %40 : vector<1x64xf32> to vector<16x64xf32>
    %42 = arith.mulf %39, %41 : vector<16x64xf32>
    %c3 = arith.constant 3 : index
    %c0_27 = arith.constant 0 : index
    %43 = vector.load %arg10[%c3, %c0_27] : memref<32x64xf32, #tpu.memory_space<vmem>>, vector<16x64xf32>
    %44 = vector.extract_strided_slice %38 {offsets = [0, 0], sizes = [1, 64], strides = [1, 1]} : vector<11x64xf32> to vector<1x64xf32>
    %45 = vector.broadcast %44 : vector<1x64xf32> to vector<16x64xf32>
    %46 = arith.mulf %43, %45 : vector<16x64xf32>
    %47 = arith.addf %42, %46 : vector<16x64xf32>
    %c4 = arith.constant 4 : index
    %c0_28 = arith.constant 0 : index
    %48 = vector.load %arg10[%c4, %c0_28] : memref<32x64xf32, #tpu.memory_space<vmem>>, vector<16x64xf32>
    %49 = vector.extract_strided_slice %38 {offsets = [1, 0], sizes = [1, 64], strides = [1, 1]} : vector<11x64xf32> to vector<1x64xf32>
    %50 = vector.broadcast %49 : vector<1x64xf32> to vector<16x64xf32>
    %51 = arith.mulf %48, %50 : vector<16x64xf32>
    %52 = arith.addf %47, %51 : vector<16x64xf32>
    %c5 = arith.constant 5 : index
    %c0_29 = arith.constant 0 : index
    %53 = vector.load %arg10[%c5, %c0_29] : memref<32x64xf32, #tpu.memory_space<vmem>>, vector<16x64xf32>
    %54 = vector.extract_strided_slice %38 {offsets = [2, 0], sizes = [1, 64], strides = [1, 1]} : vector<11x64xf32> to vector<1x64xf32>
    %55 = vector.broadcast %54 : vector<1x64xf32> to vector<16x64xf32>
    %56 = arith.mulf %53, %55 : vector<16x64xf32>
    %57 = arith.addf %52, %56 : vector<16x64xf32>
    %c6 = arith.constant 6 : index
    %c0_30 = arith.constant 0 : index
    %58 = vector.load %arg10[%c6, %c0_30] : memref<32x64xf32, #tpu.memory_space<vmem>>, vector<16x64xf32>
    %59 = vector.extract_strided_slice %38 {offsets = [3, 0], sizes = [1, 64], strides = [1, 1]} : vector<11x64xf32> to vector<1x64xf32>
    %60 = vector.broadcast %59 : vector<1x64xf32> to vector<16x64xf32>
    %61 = arith.mulf %58, %60 : vector<16x64xf32>
    %62 = arith.addf %57, %61 : vector<16x64xf32>
    %c7 = arith.constant 7 : index
    %c0_31 = arith.constant 0 : index
    %63 = vector.load %arg10[%c7, %c0_31] : memref<32x64xf32, #tpu.memory_space<vmem>>, vector<16x64xf32>
    %64 = vector.extract_strided_slice %38 {offsets = [4, 0], sizes = [1, 64], strides = [1, 1]} : vector<11x64xf32> to vector<1x64xf32>
    %65 = vector.broadcast %64 : vector<1x64xf32> to vector<16x64xf32>
    %66 = arith.mulf %63, %65 : vector<16x64xf32>
    %67 = arith.addf %62, %66 : vector<16x64xf32>
    %c9 = arith.constant 9 : index
    %c0_32 = arith.constant 0 : index
    %68 = vector.load %arg10[%c9, %c0_32] : memref<32x64xf32, #tpu.memory_space<vmem>>, vector<16x64xf32>
    %69 = vector.extract_strided_slice %38 {offsets = [6, 0], sizes = [1, 64], strides = [1, 1]} : vector<11x64xf32> to vector<1x64xf32>
    %70 = vector.broadcast %69 : vector<1x64xf32> to vector<16x64xf32>
    %71 = arith.mulf %68, %70 : vector<16x64xf32>
    %72 = arith.addf %67, %71 : vector<16x64xf32>
    %c10 = arith.constant 10 : index
    %c0_33 = arith.constant 0 : index
    %73 = vector.load %arg10[%c10, %c0_33] : memref<32x64xf32, #tpu.memory_space<vmem>>, vector<16x64xf32>
    %74 = vector.extract_strided_slice %38 {offsets = [7, 0], sizes = [1, 64], strides = [1, 1]} : vector<11x64xf32> to vector<1x64xf32>
    %75 = vector.broadcast %74 : vector<1x64xf32> to vector<16x64xf32>
    %76 = arith.mulf %73, %75 : vector<16x64xf32>
    %77 = arith.addf %72, %76 : vector<16x64xf32>
    %c11 = arith.constant 11 : index
    %c0_34 = arith.constant 0 : index
    %78 = vector.load %arg10[%c11, %c0_34] : memref<32x64xf32, #tpu.memory_space<vmem>>, vector<16x64xf32>
    %79 = vector.extract_strided_slice %38 {offsets = [8, 0], sizes = [1, 64], strides = [1, 1]} : vector<11x64xf32> to vector<1x64xf32>
    %80 = vector.broadcast %79 : vector<1x64xf32> to vector<16x64xf32>
    %81 = arith.mulf %78, %80 : vector<16x64xf32>
    %82 = arith.addf %77, %81 : vector<16x64xf32>
    %c12 = arith.constant 12 : index
    %c0_35 = arith.constant 0 : index
    %83 = vector.load %arg10[%c12, %c0_35] : memref<32x64xf32, #tpu.memory_space<vmem>>, vector<16x64xf32>
    %84 = vector.extract_strided_slice %38 {offsets = [9, 0], sizes = [1, 64], strides = [1, 1]} : vector<11x64xf32> to vector<1x64xf32>
    %85 = vector.broadcast %84 : vector<1x64xf32> to vector<16x64xf32>
    %86 = arith.mulf %83, %85 : vector<16x64xf32>
    %87 = arith.addf %82, %86 : vector<16x64xf32>
    %c13 = arith.constant 13 : index
    %c0_36 = arith.constant 0 : index
    %88 = vector.load %arg10[%c13, %c0_36] : memref<32x64xf32, #tpu.memory_space<vmem>>, vector<16x64xf32>
    %89 = vector.extract_strided_slice %38 {offsets = [10, 0], sizes = [1, 64], strides = [1, 1]} : vector<11x64xf32> to vector<1x64xf32>
    %90 = vector.broadcast %89 : vector<1x64xf32> to vector<16x64xf32>
    %91 = arith.mulf %88, %90 : vector<16x64xf32>
    %92 = arith.addf %87, %91 : vector<16x64xf32>
    %93 = vector.broadcast %1 : vector<16x1xf32> to vector<16x64xf32>
    %94 = arith.mulf %92, %93 : vector<16x64xf32>
    %c0_37 = arith.constant 0 : index
    %c0_38 = arith.constant 0 : index
    %c0_39 = arith.constant 0 : index
    %95 = vector.load %arg9[%c0_37, %c0_38, %c0_39] : memref<1x16x64xf32, #tpu.memory_space<vmem>>, vector<1x16x64xf32>
    %96 = vector.shape_cast %95 : vector<1x16x64xf32> to vector<16x64xf32>
    %97 = vector.shape_cast %94 : vector<16x64xf32> to vector<1x16x64xf32>
    tpu.vector_store %arg9[%c0_37, %c0_38, %c0_39], %97 {strides = array<i32>} : memref<1x16x64xf32, #tpu.memory_space<vmem>>, vector<1x16x64xf32>,
    return
  }
  func.func @transform_0(%arg0: i32, %arg1: i32) -> (i32, i32, i32) {
    %c0_i32 = arith.constant 0 : i32
    %c0_i32_0 = arith.constant 0 : i32
    return %arg1, %arg0, %c0_i32 : i32, i32, i32
  }
  func.func @transform_1(%arg0: i32, %arg1: i32) -> (i32, i32, i32) {
    %c2_i32 = arith.constant 2 : i32
    %0 = arith.muli %arg0, %c2_i32 : i32
    %c1_i32 = arith.constant 1 : i32
    %1 = arith.subi %0, %c1_i32 : i32
    %c0_i32 = arith.constant 0 : i32
    %2 = arith.maxsi %1, %c0_i32 : i32
    %c0_i32_0 = arith.constant 0 : i32
    %c0_i32_1 = arith.constant 0 : i32
    return %arg1, %2, %c0_i32_0 : i32, i32, i32
  }
  func.func @transform_2(%arg0: i32, %arg1: i32) -> (i32, i32, i32) {
    %c1_i32 = arith.constant 1 : i32
    %0 = arith.addi %arg0, %c1_i32 : i32
    %c2_i32 = arith.constant 2 : i32
    %1 = arith.muli %0, %c2_i32 : i32
    %c5_i32 = arith.constant 5 : i32
    %2 = arith.minsi %1, %c5_i32 : i32
    %c0_i32 = arith.constant 0 : i32
    %c0_i32_0 = arith.constant 0 : i32
    return %arg1, %2, %c0_i32 : i32, i32, i32
  }
  func.func @transform_3(%arg0: i32, %arg1: i32) -> (i32, i32, i32) {
    %c0_i32 = arith.constant 0 : i32
    %c0_i32_0 = arith.constant 0 : i32
    return %arg1, %arg0, %c0_i32 : i32, i32, i32
  }
  func.func @transform_4(%arg0: i32, %arg1: i32) -> (i32, i32, i32) {
    %c2_i32 = arith.constant 2 : i32
    %0 = arith.muli %arg0, %c2_i32 : i32
    %c1_i32 = arith.constant 1 : i32
    %1 = arith.subi %0, %c1_i32 : i32
    %c0_i32 = arith.constant 0 : i32
    %2 = arith.maxsi %1, %c0_i32 : i32
    %c0_i32_0 = arith.constant 0 : i32
    %c0_i32_1 = arith.constant 0 : i32
    return %arg1, %2, %c0_i32_0 : i32, i32, i32
  }
  func.func @transform_5(%arg0: i32, %arg1: i32) -> (i32, i32, i32) {
    %c1_i32 = arith.constant 1 : i32
    %0 = arith.addi %arg0, %c1_i32 : i32
    %c2_i32 = arith.constant 2 : i32
    %1 = arith.muli %0, %c2_i32 : i32
    %c5_i32 = arith.constant 5 : i32
    %2 = arith.minsi %1, %c5_i32 : i32
    %c0_i32 = arith.constant 0 : i32
    %c0_i32_0 = arith.constant 0 : i32
    return %arg1, %2, %c0_i32 : i32, i32, i32
  }
  func.func @transform_6(%arg0: i32, %arg1: i32) -> (i32, i32) {
    %c0_i32 = arith.constant 0 : i32
    %c0_i32_0 = arith.constant 0 : i32
    %c0_i32_1 = arith.constant 0 : i32
    return %c0_i32, %c0_i32_0 : i32, i32
  }
  func.func @transform_7(%arg0: i32, %arg1: i32) -> (i32, i32, i32) {
    %c0_i32 = arith.constant 0 : i32
    %c0_i32_0 = arith.constant 0 : i32
    return %arg1, %arg0, %c0_i32 : i32, i32, i32
  }
}

</mosaic_0001>

<bundles_post_ra>
// kernel: tpu_custom_call.1
= control target key start
LH: loop header
LB: loop body
LE: loop exit
PB: predicated region body
PF: predicated region fallthrough
CT: control target
= control target key end

     0   :  { %s1152_s24 = smov 0   ;;  %s1154_s25 = smov 0   ;;  %s1306_s0 = inlined_call_operand.vmem [shape: f32[2,45,64], index: 0, kind: input, shape index: {}]   ;;  %s1307_s1 = inlined_call_operand.vmem [shape: f32[2,45,64], index: 1, kind: input, shape index: {}]   ;;  %s1308_s2 = inlined_call_operand.vmem [shape: f32[2,45,64], index: 2, kind: input, shape index: {}]   ;;  %s1309_s3 = inlined_call_operand.vmem [shape: f32[2,45,1], index: 3, kind: input, shape index: {}]   ;;  %s1310_s4 = inlined_call_operand.vmem [shape: f32[2,45,1], index: 4, kind: input, shape index: {}]   ;;  %s1311_s5 = inlined_call_operand.vmem [shape: f32[2,45,1], index: 5, kind: input, shape index: {}]   ;;  %s1312_s6 = inlined_call_operand.vmem [shape: f32[11,64], index: 6, kind: input, shape index: {}]   ;;  %s1313_s7 = inlined_call_operand.vmem [shape: f32[2,45,64], index: 7, kind: output, shape index: {}]  }
   0x1   :  { %1314 = sst [smem:[#allocation3_spill]] %s1309_s3  ;;  %s1156_s26 = smov 0  }
   0x2   :  { %s1158_s27 = smov 0   ;;  %s1160_s28 = smov 0  }
   0x3 LB: > { %s26_s29 = sadd.s32 1, %s1101_s26  ;;  %s29_s30 = sadd.s32 1, %s1105_s27  ;;  %s1109_s28 = sphi %s1160_s28, %s17_s28   ;;  %s1105_s27 = sphi %s1158_s27, %s1319_s27   ;;  %s1101_s26 = sphi %s1156_s26, %s1318_s26   ;;  %s1097_s25 = sphi %s1154_s25, %s1317_s25   ;;  %s1093_s24 = sphi %s1152_s24, %s1316_s24  }
   0x4   : > { %p27_p0 = scmp.ge.s32.totalorder %s26_s29, 2  ;;  %p971_p1 = scmp.ge.s32.totalorder %s1109_s28, 1 }
   0x5   : > { %p399_p2 = scmp.lt.s32.totalorder %s1109_s28, 7 }
   0x6   : > { %s1321_s29 = smov (%p27_p0, %s26_s29), 0  ;;  %s1323_s30 = smov (!%p27_p0, %s29_s30), %s1105_s27 }
   0x7   : > { %p400_p3 = pnand %p971_p1, %p399_p2  ;;  %p31_p4 = scmp.ge.s32.totalorder %s1323_s30, 3 }
   0x8   : > { %s972_s8 = sshll.u32 (!%p400_p3), %s1097_s25, 1  ;;  %p497_p5 = scmp.lt.s32.totalorder (!%p400_p3), %s1093_s24, 1  ;;  %v1111_v0 = vmov (!%p400_p3), 0   ;;  %vm606_vm0 = vcmask (!%p400_p3), 523264  }
   0x9   : > { %s1325_s30 = smov (%p31_p4, %s1323_s30), 0  ;;  %403 = sbr.rel (%p400_p3) target bundleno = 333 (0x14d), region = 48 }
   0xa   : > { %1069 = vset.pattern.permute.xlu0 (!%p400_p3), %v1111_v0  ;;  %p499_p6 = scmp.lt.s32.totalorder (!%p400_p3), %s972_s8, 5  ;;  %s975_s9 = sadd.s32 (!%p400_p3), 4294967295, %s972_s8 }
   0xb   : > { %p508_p7 = scmp.gt.s32.totalorder (!%p400_p3), %s975_s9, 0  ;;  %p976_p8 = scmp.lt.s32.totalorder (!%p400_p3), %s975_s9, 5 }
   0xc   : > { %s1020_s12 = sadd.s32 (!%p400_p3), 2, %s972_s8  ;;  %s1315_s3 = sld [smem:[#allocation3_spill]] (!%p400_p3) }
   0xd   : > { %p524_p9 = scmp.lt.s32.totalorder (!%p400_p3), %s1020_s12, 5  ;;  %p1004_p10 = scmp.ne.s32.totalorder (!%p400_p3), %s1097_s25, 2 }
  0x10   : > { %s1327_s24 = smov (!%p497_p5, %s1093_s24), 1  ;;  %s1329_s9 = smov (!%p508_p7, %s975_s9), 0 }
  0x11   : > { %s500_s10 = scalar_select %p499_p6, %s972_s8, 5 }
  0x12   : > { %s1027_s11 = smul.u32 6, %s1327_s24  ;;  %s1331_s12 = smov (!%p524_p9, %s1020_s12), 5  ;;  %v613_v9 = vlaneseq (!%p1004_p10) }
  0x13   : > { %s1333_s9 = smov (!%p976_p8, %s1329_s9), 5  ;;  %s1335_s12 = smov (!%p524_p9, %s1331_s12), 5 }
  0x14   : > { %s502_s13 = sadd.s32 %s1027_s11, %s500_s10  ;;  %s515_s15 = sadd.s32 %s1027_s11, %s1333_s9  ;;  %v614_v10 = vshrl.u32 (!%p1004_p10), %v613_v9, 7 }
  0x15   : > { %s973_s14 = sshll.u32 %s502_s13, 3  ;;  %s1188_s19 = sshll.u32 %s515_s15, 3 }
  0x16   : > { %s546_s18 = scalar_lea.vmem %s1315_s3, %s973_s14  ;;  %s531_s20 = sadd.s32 %s1027_s11, %s1335_s12  ;;  %v615_v13 = vadd.s32 (!%p1004_p10), 8, %v614_v10 }
  0x17   : > { %v590_v1 = vld [vmem:[%s546_s18] sm:$0xff]  ;;  %s517_s23 = scalar_lea.vmem %s1307_s1, %s1188_s19  ;;  %s986_s24 = sshll.u32 %s531_s20, 3  ;;  %v591_v2 = vld [vmem:[%s546_s18 + $0x8] sm:$0xff] }
  0x18   : > { %596 = vperm.xlu0 %1069, %v590_v1   ;;  %s1197_s9 = scalar_lea.vmem %s1308_s2, %s986_s24  ;;  %s559_s15 = scalar_lea.vmem %s1310_s4, %s1188_s19 }
  0x19   : > { %s1206_s11 = scalar_lea.vmem %s1311_s5, %s986_s24  ;;  %s1211_s20 = scalar_lea.vmem %s1313_s7, %s973_s14 }
  0x1a   : > { %s504_s10 = scalar_lea.vmem %s1306_s0, %s973_s14  ;;  %s1005_s3 = sshll.u32 (!%p1004_p10), %s1097_s25, 4 }
  0x1b   : > { %v592_v3 = vld [vmem:[%s504_s10] sm:$0xff]  ;;  %v593_v6 = vld [vmem:[%s504_s10 + $0x8] sm:$0xff]  ;;  %s617_s14 = ssub.s32 (!%p1004_p10), 45, %s1005_s3 }
  0x1c   : > { %601 = vperm.xlu0 %1069, %v591_v2   ;;  %v618_v11 = vstv (!%p1004_p10), %s617_s14 }
  0x1d   : > { %vm619_vm1 = vcmp.lt.s32.totalorder (!%p1004_p10), %v614_v10, %v618_v11  ;;  %vm620_vm2 = vcmp.lt.s32.totalorder (!%p1004_p10), %v615_v13, %v618_v11 }
  0x97   : > { %v1216_v4 = vpop.permute.xlu0 %596 }
  0x98   : > { %v604_v5 = vmul.f32 %v1216_v4, %v592_v3  ;;  %612 = sbr.rel (%p1004_p10) target bundleno = 168 (0xa8), region = 52 }
  0x9a   : > { %607 = vst.msk [vmem:[#allocation2 + $0x8] sm:$0xff] %vm606_vm0, %v604_v5 }
  0x9b   : > { %v1220_v7 = vpop.permute.xlu0 %601 }
  0x9c   : > { %v605_v8 = vmul.f32 %v1220_v7, %v593_v6 }
  0x9e   : > { %608 = vst.msk [vmem:[#allocation2 + $0x10] sm:$0xff] %vm606_vm0, %v605_v8 }
  0xa1   : > { %v621_v12 = vld [vmem:[#allocation2 + $0x8] sm:$0xff] }
  0xa2   : > { %v627_v15 = vsel %vm619_vm1, %v621_v12, 0.0 }
  0xa3   : > { %629 = vst.msk [vmem:[#allocation2 + $0x8] sm:$0xff] %vm606_vm0, %v627_v15 }
  0xa5   : > { %v622_v14 = vld [vmem:[#allocation2 + $0x10] sm:$0xff] }
  0xa6   : > { %v628_v16 = vsel %vm620_vm2, %v622_v14, 0.0 }
  0xa7   : > { %630 = vst.msk [vmem:[#allocation2 + $0x10] sm:$0xff] %vm606_vm0, %v628_v16 }
  0xa8 PF: > { %1070 = vset.pattern.permute.xlu0 %v1111_v0  ;;  %v632_v17 = vld [vmem:[%s559_s15] sm:$0xff]  ;;  %v645_v19 = vlaneseq  ;;  %p639_p11 = scmp.gt.s32.totalorder %s1097_s25, 0  ;;  %s1025_s15 = sshll.u32 %s1097_s25, 4  ;;  %v665_v8 = vld [vmem:[%s1312_s6 + $0x8] sm:$0x7] }
  0xa9   : > { %635 = vperm.xlu0 %1070, %v632_v17   ;;  %v653_v18 = vld [vmem:[%s1206_s11] sm:$0xff]  ;;  %s1026_s11 = sadd.s32 16, %s1025_s15 }
  0xaa   : > { %v1234_v20 = vshrl.u32 %v645_v19, 7  ;;  %v664_v23 = vld [vmem:[%s1312_s6] sm:$0xff]  ;;  %s640_s17 = scalar_select %p639_p11, 1, 0  ;;  %v649_v35 = vstv %s1026_s11  ;;  %v666_v56 = vld [vmem:[#allocation2 + $0x8] sm:$0xff] }
  0xab   : > { %v631_v40 = vld [vmem:[%s517_s23] sm:$0xff] }
  0xac   : > { %v670_v21 = vsub.s32 5, %v1234_v20  ;;  %v678_v22 = vsub.s32 0, %v1234_v20  ;;  %v688_v26 = vsub.s32 1, %v1234_v20  ;;  %v698_v32 = vsub.s32 2, %v1234_v20  ;;  %v652_v48 = vld [vmem:[%s1197_s9] sm:$0xff] }
  0xad   : > { %656 = vperm.xlu0 %1070, %v653_v18   ;;  %v641_v34 = vstv %s640_s17  ;;  %v708_v39 = vsub.s32 3, %v1234_v20  ;;  %v650_v43 = vadd.s32 %v649_v35, %v1234_v20  ;;  %v718_v51 = vsub.s32 4, %v1234_v20 }
  0xae   : > { %v671_v24 = vrot.slane %v664_v23, %v670_v21  ;;  %v679_v25 = vrot.slane %v664_v23, %v678_v22  ;;  %v667_v27 = vld [vmem:[#allocation2 + $0x10] sm:$0xff]  ;;  %v689_v31 = vrot.slane %v664_v23, %v688_v26  ;;  %v699_v38 = vrot.slane %v664_v23, %v698_v32 }
  0xaf   : > { %v1245_v28 = vld [vmem:[#allocation2 + $0xb] sm:$0xff]  ;;  %vm642_vm3 = vcmp.eq.s32.totalorder %v641_v34, 1  ;;  %v709_v47 = vrot.slane %v664_v23, %v708_v39  ;;  %vm651_vm4 = vcmp.lt.s32.totalorder %v650_v43, 45  ;;  %v719_v59 = vrot.slane %v664_v23, %v718_v51 }
  0xb0   : > { %v673_v29 = vmul.f32 %v671_v24, %v667_v27  ;;  %v681_v30 = vmul.f32 %v679_v25, %v1245_v28  ;;  %v1252_v33 = vld [vmem:[#allocation2 + $0xc] sm:$0xff]  ;;  %v728_v60 = vsub.s32 6, %v1234_v20  ;;  %v672_v61 = vmul.f32 %v671_v24, %v666_v56 }
  0xb1   : > { %v691_v37 = vmul.f32 %v689_v31, %v1252_v33  ;;  %v1263_v41 = vld [vmem:[#allocation2 + $0xd] sm:$0xff]  ;;  %v738_v0 = vsub.s32 7, %v1234_v20  ;;  %v748_v19 = vrot.slane %v665_v8, %v678_v22 }
  0xb2   : > { %v683_v36 = vadd.f32 %v681_v30, %v673_v29  ;;  %v701_v46 = vmul.f32 %v699_v38, %v1263_v41  ;;  %v705_v49 = vld [vmem:[#allocation2 + $0xe] sm:$0xff]  ;;  %v729_v5 = vrot.slane %v664_v23, %v728_v60 }
  0xb3   : > { %v711_v55 = vmul.f32 %v709_v47, %v705_v49  ;;  %v715_v57 = vld [vmem:[#allocation2 + $0xf] sm:$0xff]  ;;  %v739_v12 = vrot.slane %v664_v23, %v738_v0 }
  0xb4   : > { %v693_v45 = vadd.f32 %v691_v37, %v683_v36  ;;  %v721_v62 = vmul.f32 %v719_v59, %v715_v57  ;;  %v724_v18 = vld [vmem:[#allocation2 + $0x9] sm:$0xff]  ;;  %v766_v36 = vrot.slane %v665_v8, %v698_v32 }
  0xb5   : > { %v730_v23 = vmul.f32 %v729_v5, %v724_v18  ;;  %v734_v35 = vld [vmem:[#allocation2 + $0xa] sm:$0xff] }
  0xb6   : > { %v703_v54 = vadd.f32 %v701_v46, %v693_v45  ;;  %v749_v46 = vmul.f32 %v748_v19, %v1245_v28  ;;  %v767_v51 = vmul.f32 %v766_v36, %v1263_v41 }
  0xb8   : > { %v713_v63 = vadd.f32 %v711_v55, %v703_v54 }
  0xba   : > { %v723_v11 = vadd.f32 %v721_v62, %v713_v63 }
 0x128   : > { %v636_v42 = vpop.permute.xlu0 %635 }
 0x129   : > { %v638_v44 = vmul.f32 %v636_v42, %v631_v40 }
 0x12b   : > { %v643_v50 = vsel %vm642_vm3, %v638_v44, 0.0  ;;  %v740_v44 = vmul.f32 %v739_v12, %v734_v35 }
 0x12c   : > { %644 = vst.msk [vmem:[#allocation2] sm:$0xff] %vm606_vm0, %v643_v50  ;;  %v657_v52 = vpop.permute.xlu0 %656 }
 0x12d   : > { %v659_v53 = vmul.f32 %v657_v52, %v652_v48 }
 0x12f   : > { %v662_v58 = vsel %vm651_vm4, %v659_v53, 0.0 }
 0x130   : > { %663 = vst.msk [vmem:[#allocation2 + $0x18] sm:$0xff] %vm606_vm0, %v662_v58 }
 0x133   : > { %v674_v1 = vld [vmem:[#allocation2 + $0x3] sm:$0xff] }
 0x134   : > { %v684_v2 = vld [vmem:[#allocation2 + $0x4] sm:$0xff]  ;;  %v680_v3 = vmul.f32 %v679_v25, %v674_v1  ;;  %v757_v25 = vrot.slane %v665_v8, %v688_v26 }
 0x135   : > { %v694_v6 = vld [vmem:[#allocation2 + $0x5] sm:$0xff]  ;;  %v690_v10 = vmul.f32 %v689_v31, %v684_v2 }
 0x136   : > { %v682_v9 = vadd.f32 %v680_v3, %v672_v61  ;;  %v704_v13 = vld [vmem:[#allocation2 + $0x6] sm:$0xff]  ;;  %v700_v17 = vmul.f32 %v699_v38, %v694_v6  ;;  %v758_v20 = vmul.f32 %v757_v25, %v1252_v33 }
 0x137   : > { %v725_v14 = vld [vmem:[#allocation2 + $0x11] sm:$0xff]  ;;  %v714_v24 = vld [vmem:[#allocation2 + $0x7] sm:$0xff]  ;;  %v710_v30 = vmul.f32 %v709_v47, %v704_v13 }
 0x138   : > { %v735_v15 = vld [vmem:[#allocation2 + $0x12] sm:$0xff]  ;;  %v692_v16 = vadd.f32 %v690_v10, %v682_v9  ;;  %v731_v21 = vmul.f32 %v729_v5, %v725_v14  ;;  %v720_v39 = vmul.f32 %v719_v59, %v714_v24 }
 0x139   : > { %v744_v27 = vld [vmem:[#allocation2 + $0x13] sm:$0xff]  ;;  %v741_v34 = vmul.f32 %v739_v12, %v735_v15 }
 0x13a   : > { %v702_v29 = vadd.f32 %v700_v17, %v692_v16  ;;  %v733_v31 = vadd.f32 %v731_v21, %v723_v11  ;;  %v753_v37 = vld [vmem:[#allocation2 + $0x14] sm:$0xff]  ;;  %v750_v22 = vmul.f32 %v748_v19, %v744_v27 }
 0x13b   : > { %v762_v42 = vld [vmem:[#allocation2 + $0x15] sm:$0xff]  ;;  %v759_v45 = vmul.f32 %v757_v25, %v753_v37 }
 0x13c   : > { %v712_v38 = vadd.f32 %v710_v30, %v702_v29  ;;  %v743_v40 = vadd.f32 %v741_v34, %v733_v31  ;;  %v768_v49 = vmul.f32 %v766_v36, %v762_v42 }
 0x13e   : > { %v722_v43 = vadd.f32 %v720_v39, %v712_v38  ;;  %v752_v26 = vadd.f32 %v750_v22, %v743_v40 }
 0x140   : > { %v732_v47 = vadd.f32 %v730_v23, %v722_v43  ;;  %v761_v48 = vadd.f32 %v759_v45, %v752_v26 }
 0x142   : > { %v742_v32 = vadd.f32 %v740_v44, %v732_v47  ;;  %v770_v50 = vadd.f32 %v768_v49, %v761_v48 }
 0x144   : > { %v751_v52 = vadd.f32 %v749_v46, %v742_v32  ;;  %v772_v53 = vmul.f32 %v770_v50, %v1220_v7 }
 0x146   : > { %v760_v54 = vadd.f32 %v758_v20, %v751_v52  ;;  %774 = vst.msk [vmem:[%s1211_s20 + $0x8] sm:$0xff] %vm606_vm0, %v772_v53 }
 0x148   : > { %v769_v55 = vadd.f32 %v767_v51, %v760_v54 }
 0x14a   : > { %v771_v56 = vmul.f32 %v769_v55, %v1216_v4 }
 0x14c   : > { %773 = vst.msk [vmem:[%s1211_s20] sm:$0xff] %vm606_vm0, %v771_v56 }
 0x14d PF: > { %s17_s28 = sadd.s32 1, %s1109_s28   ;;  %s1316_s24 = smov %s1101_s26 }
 0x14e   : > { %p14_p12 = scmp.ge.s32.totalorder %s17_s28, 8   ;;  %s1317_s25 = smov %s1105_s27 }
 0x14f   : > { %s1318_s26 = smov %s1321_s29  ;;  %s1319_s27 = smov %s1325_s30 }
 0x150   :  { %16 = sbr.rel (!%p14_p12) target bundleno = 3 (0x3), region = 97 }

</bundles_post_ra>
